<compile_context>
chip_gen: v7x
topology: tpu7x:2x2x1
jax: 0.10.0
libtpu: 0.0.40
codegen_flags: <defaults>
</compile_context>

<pallas_src>
import functools

import jax
import jax.numpy as jnp
from jax import lax
from jax.experimental import pallas as pl
from jax.experimental.pallas import tpu as pltpu

W_BIT = 4
A_BIT = 4
W_LEVELS = float(2 ** W_BIT - 1)   # 15
A_LEVELS = float(2 ** A_BIT - 1)   # 15
BN_EPS = 1e-5

VMEM = pltpu.MemorySpace.VMEM
# NOTE: default *scoped* VMEM is 16 MiB on v5e and 32 MiB on v6e/v7x; keep the
# limit explicit (v5e would regress without it) and well under v7x's 64 MiB.
VMEM_LIMIT_BYTES = 32 * 1024 * 1024


def _round_up(x, m):
    return ((x + m - 1) // m) * m


# ----------------------------- Pallas kernels -----------------------------

def _weight_quant_kernel(w_ref, o_ref):
    # DoReFa weight quantization (w_bit = 4), emitted as integer codes 15*w_q:
    #   w  = tanh(W);  wn = w / (2*max|w|) + 0.5
    #   w_q = 2*round(wn*15)/15 - 1   ->   code = 2*round(wn*15) - 15  (odd ints)
    w = jnp.tanh(w_ref[...])
    m = jnp.max(jnp.abs(w), axis=(0, 1), keepdims=True)
    m = jnp.maximum(m, 1e-8)                      # guard all-zero weights
    wn = w / (2.0 * m) + 0.5
    o_ref[...] = 2.0 * jnp.round(wn * W_LEVELS) - W_LEVELS


def _shifted_tap(xpad_ref, pad0, rows, dh, dw, W, mask_l, mask_r):
    # Read the (dh, dw) tap of a 3x3 conv from the zero-padded flat scratch.
    off = (dh - 1) * W + (dw - 1)
    tap = xpad_ref[pad0 + off: pad0 + off + rows, :]
    if dw == 0:
        tap = jnp.where(mask_l, tap, 0.0)     # left column out of image
    elif dw == 2:
        tap = jnp.where(mask_r, tap, 0.0)     # right column out of image
    return tap


def _conv3x3_bn_act_kernel(x_ref, w_ref, scale_ref, shift_ref, o_ref, xpad_ref,
                           *, H, W, pad0, apply_act):
    # One image per grid step.  x_ref: (1, H*W, Cin) bf16 (codes / bf16 pixels);
    # w_ref: (9, Cin, Cout) bf16 codes; scale/shift: (1, Cout) f32;
    # xpad_ref: scratch (H*W + 2*pad0, Cin) f32 with zero halos (row padding).
    rows = H * W
    cin = x_ref.shape[-1]
    cout = o_ref.shape[-1]
    zpad = jnp.zeros((pad0, cin), jnp.float32)
    xpad_ref[:pad0, :] = zpad
    xpad_ref[pad0 + rows:, :] = zpad
    xpad_ref[pad0:pad0 + rows, :] = x_ref[0].astype(jnp.float32)

    col = lax.broadcasted_iota(jnp.int32, (rows, cin), 0) % W
    mask_l = col > 0
    mask_r = col < (W - 1)

    acc = jnp.zeros((rows, cout), jnp.float32)
    for dh in range(3):
        for dw in range(3):
            tap = _shifted_tap(xpad_ref, pad0, rows, dh, dw, W, mask_l, mask_r)
            acc = acc + jnp.dot(tap.astype(jnp.bfloat16), w_ref[dh * 3 + dw],
                                preferred_element_type=jnp.float32)

    y = acc * scale_ref[...] + shift_ref[...]          # eval-mode BN affine
    if apply_act:
        # DoReFa activation quantization, emitted as integer codes 0..15.
        y = jnp.round(jnp.clip(y, 0.0, 1.0) * A_LEVELS)
    o_ref[0] = y.astype(o_ref.dtype)


def _tail_fused_kernel(x_ref, wt_ref, st_ref, bt_ref, wh_ref, sh_ref, bh_ref,
                       o_ref, xpad_ref, *, H, W, pad0, n_layers):
    # Fused layers 4..7 (3x3, 64->64, no pool) + 1x1 head (64->128 padded),
    # one image per grid step; the activation stays in VMEM between layers.
    rows = H * W
    c = x_ref.shape[-1]
    zpad = jnp.zeros((pad0, c), jnp.float32)
    xpad_ref[:pad0, :] = zpad
    xpad_ref[pad0 + rows:, :] = zpad

    col = lax.broadcasted_iota(jnp.int32, (rows, c), 0) % W
    mask_l = col > 0
    mask_r = col < (W - 1)

    x = x_ref[0].astype(jnp.float32)                   # activation codes 0..15
    for l in range(n_layers):
        xpad_ref[pad0:pad0 + rows, :] = x
        acc = jnp.zeros((rows, c), jnp.float32)
        for dh in range(3):
            for dw in range(3):
                tap = _shifted_tap(xpad_ref, pad0, rows, dh, dw, W,
                                   mask_l, mask_r)
                acc = acc + jnp.dot(tap.astype(jnp.bfloat16),
                                    wt_ref[l, dh * 3 + dw],
                                    preferred_element_type=jnp.float32)
        y = acc * st_ref[l] + bt_ref[l]
        x = jnp.round(jnp.clip(y, 0.0, 1.0) * A_LEVELS)

    # 1x1 head conv (weight-quantized, with bias); Cout lane-padded to 128.
    z = jnp.dot(x.astype(jnp.bfloat16), wh_ref[...],
                preferred_element_type=jnp.float32)
    o_ref[0] = z * sh_ref[...] + bh_ref[...]


def _yolo_decode_kernel(p_ref, anc_ref, o_ref, *, nx, stride):
    # One batch element per grid step; block (1, na, no, ny*nx).
    p = p_ref[0]                                       # (na, 6, S)
    xy = p[:, 0:2, :]
    wh = p[:, 2:4, :]
    cf = p[:, 4:6, :]
    lane = lax.broadcasted_iota(jnp.int32, xy.shape, 2)
    gx = (lane % nx).astype(jnp.float32)
    gy = (lane // nx).astype(jnp.float32)
    is_x = lax.broadcasted_iota(jnp.int32, xy.shape, 1) == 0
    grid_xy = jnp.where(is_x, gx, gy)
    o_ref[0, :, 0:2, :] = (1.0 / (1.0 + jnp.exp(-xy)) + grid_xy) * stride
    o_ref[0, :, 2:4, :] = jnp.exp(wh) * anc_ref[...]   # exp(p)*anchor_wh*stride
    o_ref[0, :, 4:6, :] = 1.0 / (1.0 + jnp.exp(-cf))


# ----------------------------- wrappers (glue) -----------------------------

def quantize_weight_codes(wflat):
    # wflat: (K, Cout) float32 raw weights -> integer DoReFa codes (float32).
    return pl.pallas_call(
        _weight_quant_kernel,
        out_shape=jax.ShapeDtypeStruct(wflat.shape, jnp.float32),
        in_specs=[pl.BlockSpec(memory_space=VMEM)],
        out_specs=pl.BlockSpec(memory_space=VMEM),
    )(wflat)


def conv_bn_act(x_nhwc, lyr):
    n, h, w, cin = x_nhwc.shape
    rows = h * w
    cout = int(lyr["w"].shape[-1])
    pad0 = _round_up(w + 1, 8)
    out_dtype = jnp.bfloat16 if lyr["apply_act"] else jnp.float32
    x2 = x_nhwc.reshape(n, rows, cin)
    kern = functools.partial(_conv3x3_bn_act_kernel, H=h, W=w, pad0=pad0,
                             apply_act=lyr["apply_act"])
    out = pl.pallas_call(
        kern,
        out_shape=jax.ShapeDtypeStruct((n, rows, cout), out_dtype),
        grid=(n,),
        in_specs=[pl.BlockSpec((1, rows, cin), lambda b: (b, 0, 0)),
                  pl.BlockSpec((9, cin, cout), lambda b: (0, 0, 0)),   # resident
                  pl.BlockSpec((1, cout), lambda b: (0, 0)),
                  pl.BlockSpec((1, cout), lambda b: (0, 0))],
        out_specs=pl.BlockSpec((1, rows, cout), lambda b: (b, 0, 0)),
        scratch_shapes=[pltpu.VMEM((rows + 2 * pad0, cin), jnp.float32)],
        compiler_params=pltpu.CompilerParams(
            dimension_semantics=("parallel",),
            vmem_limit_bytes=VMEM_LIMIT_BYTES),
    )(x2, lyr["w"], lyr["scale"], lyr["shift"])
    return out.reshape(n, h, w, cout)


def maxpool2x2(y):
    # MaxPool2d(2,2) on quantized codes; quantization is monotone, so applying
    # it before the pool (inside the conv kernel) is exactly equivalent.
    return jnp.maximum(jnp.maximum(y[:, 0::2, 0::2, :], y[:, 0::2, 1::2, :]),
                       jnp.maximum(y[:, 1::2, 0::2, :], y[:, 1::2, 1::2, :]))


def tail_fused(x_nhwc, tail):
    n, h, w, c = x_nhwc.shape
    rows = h * w
    pad0 = _round_up(w + 1, 8)
    n_layers = int(tail["wt"].shape[0])
    cout = int(tail["wh"].shape[-1])
    x2 = x_nhwc.reshape(n, rows, c)
    kern = functools.partial(_tail_fused_kernel, H=h, W=w, pad0=pad0,
                             n_layers=n_layers)
    out = pl.pallas_call(
        kern,
        out_shape=jax.ShapeDtypeStruct((n, rows, cout), jnp.float32),
        grid=(n,),
        in_specs=[pl.BlockSpec((1, rows, c), lambda b: (b, 0, 0)),
                  pl.BlockSpec(tuple(tail["wt"].shape), lambda b: (0, 0, 0, 0)),
                  pl.BlockSpec(tuple(tail["st"].shape), lambda b: (0, 0, 0)),
                  pl.BlockSpec(tuple(tail["bt"].shape), lambda b: (0, 0, 0)),
                  pl.BlockSpec(tuple(tail["wh"].shape), lambda b: (0, 0)),
                  pl.BlockSpec(tuple(tail["sh"].shape), lambda b: (0, 0)),
                  pl.BlockSpec(tuple(tail["bh"].shape), lambda b: (0, 0))],
        out_specs=pl.BlockSpec((1, rows, cout), lambda b: (b, 0, 0)),
        scratch_shapes=[pltpu.VMEM((rows + 2 * pad0, c), jnp.float32)],
        compiler_params=pltpu.CompilerParams(
            dimension_semantics=("parallel",),
            vmem_limit_bytes=VMEM_LIMIT_BYTES),
    )(x2, tail["wt"], tail["st"], tail["bt"],
      tail["wh"], tail["sh"], tail["bh"])
    return out.reshape(n, h, w, cout)


def yolo_layer(head_nhwc, img_h, img_w):
    # head_nhwc: (N, ny, nx, 36); YOLOLayer with na=6 anchors [20,20], no=6.
    n, ny, nx, _ = head_nhwc.shape
    na, no = 6, 6
    s = ny * nx
    stride = float(max(img_h, img_w)) / float(max(nx, ny))
    # exp(p) * anchor_wh * stride == exp(p) * anchors (anchor_wh = anchors/stride)
    anchors = jnp.full((na, 2, 1), 20.0, jnp.float32)

    p5 = head_nhwc.reshape(n, ny, nx, na, no)
    p = jnp.transpose(p5, (0, 3, 1, 2, 4))             # (N, na, ny, nx, no)
    p_dec = jnp.transpose(p5, (0, 3, 4, 1, 2)).reshape(n, na, no, s)
    p_dec = p_dec.astype(jnp.float32)

    io_t = pl.pallas_call(
        functools.partial(_yolo_decode_kernel, nx=nx, stride=stride),
        out_shape=jax.ShapeDtypeStruct((n, na, no, s), jnp.float32),
        grid=(n,),
        in_specs=[pl.BlockSpec((1, na, no, s), lambda b: (b, 0, 0, 0)),
                  pl.BlockSpec((na, 2, 1), lambda b: (0, 0, 0))],
        out_specs=pl.BlockSpec((1, na, no, s), lambda b: (b, 0, 0, 0)),
        compiler_params=pltpu.CompilerParams(
            dimension_semantics=("parallel",)),
    )(p_dec, anchors)

    io = jnp.transpose(io_t.reshape(n, na, no, ny, nx), (0, 1, 3, 4, 2))
    io = io.reshape(n, na * ny * nx, no)
    return io, p


# ----------------------------- parameters -----------------------------

def init_params(key):
    # (Cin, Cout, k, pad, has_bn, apply_act, pool)  -- mirrors UltraNetQua.layers
    cfgs = [
        (3, 16, 3, 1, True, True, True),
        (16, 32, 3, 1, True, True, True),
        (32, 64, 3, 1, True, True, True),
        (64, 64, 3, 1, True, True, True),
        (64, 64, 3, 1, True, True, False),
        (64, 64, 3, 1, True, True, False),
        (64, 64, 3, 1, True, True, False),
        (64, 64, 3, 1, True, True, False),
        (64, 36, 1, 0, False, False, False),   # final conv has a bias (default)
    ]
    layers = []
    for i, (cin, cout, k, pad, has_bn, act, pool) in enumerate(cfgs):
        kwgt, kb, kg, kbt, km, kv = jax.random.split(jax.random.fold_in(key, i), 6)
        w = 0.1 * jax.random.normal(kwgt, (k, k, cin, cout), jnp.float32)
        if has_bn:
            gamma = 1.0 + 0.1 * jax.random.normal(kg, (cout,), jnp.float32)
            beta = 0.1 * jax.random.normal(kbt, (cout,), jnp.float32)
            mean = 0.1 * jax.random.normal(km, (cout,), jnp.float32)
            var = jax.random.uniform(kv, (cout,), jnp.float32, 0.5, 1.5)
            scale = gamma / jnp.sqrt(var + BN_EPS)      # eval-mode BN folded
            shift = beta - mean * scale
        else:
            bias = 0.1 * jax.random.normal(kb, (cout,), jnp.float32)
            scale = jnp.ones((cout,), jnp.float32)
            shift = bias
        layers.append(dict(w=w, scale=scale, shift=shift, k=k, pad=pad,
                           apply_act=act, pool=pool))
    return layers


def prepare_params(raw_layers):
    """Hoisted (run once): quantize weights to integer codes, fold the 1/15 /
    1/225 code scales into the BN affine, stack the fused-tail weights and
    lane-pad the 1x1 head's Cout to 128."""
    convs = []
    tail_w, tail_s, tail_b = [], [], []
    head = None
    for idx, lyr in enumerate(raw_layers):
        w = lyr["w"]
        k, _, cin, cout = w.shape
        kdim = k * k * cin
        codes = quantize_weight_codes(w.reshape(kdim, cout))     # 15 * w_q
        # layer 0 consumes bf16 pixels:          conv = (x . codes) / 15
        # later layers consume act codes 0..15:  conv = (codes . codes) / 225
        in_scale = W_LEVELS if idx == 0 else W_LEVELS * A_LEVELS
        scale = (lyr["scale"] / in_scale).astype(jnp.float32)
        shift = lyr["shift"].astype(jnp.float32)
        if idx < 4:                               # conv+BN+quant (+ external pool)
            convs.append(dict(
                w=codes.reshape(k * k, cin, cout).astype(jnp.bfloat16),
                scale=scale.reshape(1, cout),
                shift=shift.reshape(1, cout),
                apply_act=lyr["apply_act"]))
        elif idx < 8:                             # fused tail 3x3 layers
            tail_w.append(codes.reshape(k * k, cin, cout).astype(jnp.bfloat16))
            tail_s.append(scale.reshape(1, cout))
            tail_b.append(shift.reshape(1, cout))
        else:                                     # 1x1 head, lane-padded to 128
            cpad = 128
            wh = jnp.pad(codes, ((0, 0), (0, cpad - cout))).astype(jnp.bfloat16)
            sh = jnp.pad(scale, (0, cpad - cout)).reshape(1, cpad)
            bh = jnp.pad(shift, (0, cpad - cout)).reshape(1, cpad)
            head = dict(wh=wh, sh=sh, bh=bh, cout=cout)
    tail = dict(wt=jnp.stack(tail_w),             # (4, 9, 64, 64) bf16
                st=jnp.stack(tail_s),             # (4, 1, 64) f32
                bt=jnp.stack(tail_b),             # (4, 1, 64) f32
                wh=head["wh"], sh=head["sh"], bh=head["bh"],
                cout_head=head["cout"])
    return dict(convs=convs, tail=tail)


# ----------------------------- forward -----------------------------

def ultranet_forward(x_nchw, prepared):
    # TODO(synk): training-mode path (batch-stat BN, raw p output) not implemented;
    # this reproduces the eval-mode forward: (io.view(bs, -1, 6), (p,)).
    img_h, img_w = int(x_nchw.shape[-2]), int(x_nchw.shape[-1])
    x = jnp.transpose(x_nchw, (0, 2, 3, 1)).astype(jnp.bfloat16)   # NCHW -> NHWC
    for lyr in prepared["convs"]:
        y = conv_bn_act(x, lyr)       # full-res conv + BN + 4-bit act codes
        x = maxpool2x2(y)             # stride-2 compaction stays in XLA glue
    tail_out = tail_fused(x, prepared["tail"])                      # (N,h,w,128)
    head = tail_out[..., :prepared["tail"]["cout_head"]]            # drop padding
    io, p = yolo_layer(head, img_h, img_w)
    return io, (p,)


if __name__ == "__main__":
    key = jax.random.PRNGKey(0)
    kx, kp = jax.random.split(key)
    x = jax.random.normal(kx, (2, 3, 32, 32), jnp.float32)   # NCHW like PyTorch
    raw_params = init_params(kp)
    prepared = prepare_params(raw_params)                    # weight quant hoisted

    forward = jax.jit(functools.partial(ultranet_forward, prepared=prepared))
    io, (p,) = forward(x)
    jax.block_until_ready((io, p))

    assert io.shape == (2, 6 * 2 * 2, 6), io.shape   # (bs, na*ny*nx, no)
    assert p.shape == (2, 6, 2, 2, 6), p.shape       # (bs, na, ny, nx, no)
    print("KERNEL_OK")
</pallas_src>

<mosaic_0001>
module attributes {stable_mosaic.version = 11 : i64} {
  func.func @_weight_quant_kernel(%arg0: memref<27x16xf32, #tpu.memory_space<vmem>>, %arg1: memref<27x16xf32, #tpu.memory_space<vmem>>) attributes {dimension_semantics = [], scalar_prefetch = 0 : i64, scratch_operands = 0 : i64, tpu.core_type = #tpu.core_type<tc>} {
    %c0 = arith.constant 0 : index
    %c0_0 = arith.constant 0 : index
    %0 = vector.load %arg0[%c0, %c0_0] : memref<27x16xf32, #tpu.memory_space<vmem>>, vector<27x16xf32>
    %1 = math.tanh %0 : vector<27x16xf32>
    %2 = math.absf %1 : vector<27x16xf32>
    %3 = vector.shape_cast %2 : vector<27x16xf32> to vector<1x27x16xf32>
    %cst = arith.constant dense<0xFF800000> : vector<1xf32>
    %4 = vector.multi_reduction <maximumf>, %3, %cst [1, 2] : vector<1x27x16xf32> to vector<1xf32>
    %5 = vector.shape_cast %4 : vector<1xf32> to vector<1x1x1xf32>
    %6 = vector.extract %5[0, 0, 0] : f32 from vector<1x1x1xf32>
    %7 = vector.broadcast %6 : f32 to vector<1x1xf32>
    %cst_1 = arith.constant 9.99999993E-9 : f32
    %8 = vector.broadcast %cst_1 : f32 to vector<1x1xf32>
    %9 = arith.maximumf %7, %8 : vector<1x1xf32>
    %cst_2 = arith.constant 2.000000e+00 : f32
    %10 = vector.broadcast %cst_2 : f32 to vector<1x1xf32>
    %11 = arith.mulf %10, %9 : vector<1x1xf32>
    %12 = vector.broadcast %11 : vector<1x1xf32> to vector<27x16xf32>
    %13 = arith.divf %1, %12 : vector<27x16xf32>
    %cst_3 = arith.constant 5.000000e-01 : f32
    %14 = vector.broadcast %cst_3 : f32 to vector<27x16xf32>
    %15 = arith.addf %13, %14 : vector<27x16xf32>
    %cst_4 = arith.constant 1.500000e+01 : f32
    %16 = vector.broadcast %cst_4 : f32 to vector<27x16xf32>
    %17 = arith.mulf %15, %16 : vector<27x16xf32>
    %18 = math.roundeven %17 : vector<27x16xf32>
    %cst_5 = arith.constant 2.000000e+00 : f32
    %19 = vector.broadcast %cst_5 : f32 to vector<27x16xf32>
    %20 = arith.mulf %19, %18 : vector<27x16xf32>
    %cst_6 = arith.constant 1.500000e+01 : f32
    %21 = vector.broadcast %cst_6 : f32 to vector<27x16xf32>
    %22 = arith.subf %20, %21 : vector<27x16xf32>
    %c0_7 = arith.constant 0 : index
    %c0_8 = arith.constant 0 : index
    %23 = vector.load %arg1[%c0_7, %c0_8] : memref<27x16xf32, #tpu.memory_space<vmem>>, vector<27x16xf32>
    tpu.vector_store %arg1[%c0_7, %c0_8], %22 {strides = array<i32>} : memref<27x16xf32, #tpu.memory_space<vmem>>, vector<27x16xf32>,
    return
  }
}

</mosaic_0001>

<bundles_post_ra>
// kernel: tpu_custom_call.1
= control target key start
LH: loop header
LB: loop body
LE: loop exit
PB: predicated region body
PF: predicated region fallthrough
CT: control target
= control target key end

     0   :  { %vm20_vm0 = vcmask 130048   ;;  %vm24_vm1 = vcmask 124928   ;;  %s136_s0 = inlined_call_operand.vmem [shape: f32[27,16], index: 0, kind: input, shape index: {}]   ;;  %s137_s1 = inlined_call_operand.vmem [shape: f32[27,16], index: 1, kind: output, shape index: {}]  }
   0x1   :  { %v8_v0 = vld [vmem:[%s136_s0] sm:$0xff]  ;;  %v9_v1 = vld [vmem:[%s136_s0 + $0x8] sm:$0xff]  ;;  %v10_v2 = vld [vmem:[%s136_s0 + $0x10] sm:$0xff] }
   0x2   :  { %v11_v3 = vld [vmem:[%s136_s0 + $0x18] sm:$0x7]  ;;  %84 = vtanh.f32 %v8_v0 }
   0x3   :  { %86 = vtanh.f32 %v9_v1 }
   0x4   :  { %88 = vtanh.f32 %v10_v2 }
   0x5   :  { %90 = vtanh.f32 %v11_v3 }
   0xc   :  { %v85_v4 = vpop.eup %84 }
   0xd   :  { %v87_v5 = vpop.eup %86  ;;  %v16_v6 = vand.u32 2147483647, %v85_v4 }
   0xe   :  { %v89_v7 = vpop.eup %88  ;;  %v17_v8 = vand.u32 2147483647, %v87_v5 }
   0xf   :  { %v91_v9 = vpop.eup %90  ;;  %v18_v10 = vand.u32 2147483647, %v89_v7  ;;  %v21_v11 = vsel %vm20_vm0, %v16_v6, -inf }
  0x10   :  { %v19_v12 = vand.u32 2147483647, %v91_v9  ;;  %v22_v13 = vsel %vm20_vm0, %v17_v8, -inf }
  0x11   :  { %v23_v14 = vsel %vm20_vm0, %v18_v10, -inf  ;;  %v26_v15 = vmax.f32 %v21_v11, %v22_v13 }
  0x12   :  { %v25_v16 = vsel %vm24_vm1, %v19_v12, -inf }
  0x13   :  { %v27_v17 = vmax.f32 %v23_v14, %v25_v16 }
  0x15   :  { %v28_v18 = vmax.f32 %v26_v15, %v27_v17 }
  0x17   :  { %29 = vmax.xlane.f32.xlu0 %v28_v18 }
  0xa4   :  { %v30_v19 = vpop.xlane.xlu0 %29 }
  0xa5   :  { %v31_v20 = vrot.slane %v30_v19, 4 }
  0xa7   :  { %v32_v21 = vmax.f32 %v30_v19, %v31_v20 }
  0xa9   :  { %v33_v22 = vrot.slane %v32_v21, 2 }
  0xab   :  { %v34_v23 = vmax.f32 %v32_v21, %v33_v22 }
  0xad   :  { %v35_v24 = vrot.slane %v34_v23, 1 }
  0xaf   :  { %v36_v25 = vmax.f32 %v34_v23, %v35_v24 }
  0xb1   :  { %78 = vpush %v36_v25 }
  0xe2   :  { %s79_s0 = spop %78 }
  0xe3   :  { %v38_v26 = vstv %s79_s0 }
  0xe4   :  { %v39_v27 = vmax.f32 %v38_v26, 1e-08 }
  0xe6   :  { %v40_v28 = vmul.f32 2.0, %v39_v27 }
  0xe8   :  { %92 = vrcp.f32 %v40_v28 }
  0xf2   :  { %v93_v29 = vpop.eup %92 }
  0xf3   :  { %v42_v30 = vmul.f32 %v93_v29, %v85_v4  ;;  %v43_v31 = vmul.f32 %v93_v29, %v87_v5  ;;  %v44_v32 = vmul.f32 %v93_v29, %v89_v7  ;;  %v45_v33 = vmul.f32 %v93_v29, %v91_v9 }
  0xf5   :  { %v46_v34 = vadd.f32 0.5, %v42_v30  ;;  %v47_v35 = vadd.f32 0.5, %v43_v31  ;;  %v48_v36 = vadd.f32 0.5, %v44_v32  ;;  %v49_v37 = vadd.f32 0.5, %v45_v33 }
  0xf7   :  { %v50_v38 = vmul.f32 15.0, %v46_v34  ;;  %v51_v39 = vmul.f32 15.0, %v47_v35  ;;  %v52_v40 = vmul.f32 15.0, %v48_v36  ;;  %v53_v41 = vmul.f32 15.0, %v49_v37 }
  0xf9   :  { %v80_v42 = vround.rtne.f32 %v50_v38  ;;  %v81_v43 = vround.rtne.f32 %v51_v39  ;;  %v82_v44 = vround.rtne.f32 %v52_v40  ;;  %v83_v45 = vround.rtne.f32 %v53_v41 }
  0xfb   :  { %v58_v46 = vmul.f32 2.0, %v80_v42  ;;  %v59_v47 = vmul.f32 2.0, %v81_v43  ;;  %v60_v48 = vmul.f32 2.0, %v82_v44  ;;  %v61_v49 = vmul.f32 2.0, %v83_v45 }
  0xfd   :  { %v74_v50 = vadd.f32 -15.0, %v58_v46  ;;  %v75_v51 = vadd.f32 -15.0, %v59_v47  ;;  %v76_v52 = vadd.f32 -15.0, %v60_v48  ;;  %v77_v53 = vadd.f32 -15.0, %v61_v49 }
  0xff   :  { %66 = vst.msk [vmem:[%s137_s1] sm:$0xff] %vm20_vm0, %v74_v50  ;;  %67 = vst.msk [vmem:[%s137_s1 + $0x8] sm:$0xff] %vm20_vm0, %v75_v51 }
 0x100   :  { %68 = vst.msk [vmem:[%s137_s1 + $0x10] sm:$0xff] %vm20_vm0, %v76_v52 }
 0x101   :  { %69 = vst.msk [vmem:[%s137_s1 + $0x18] sm:$0x7] %vm24_vm1, %v77_v53 }

</bundles_post_ra>
